<compile_context>
chip_gen: v5e
topology: v5e:2x2
jax: 0.10.0
libtpu: 0.0.40
codegen_flags: <defaults>
</compile_context>

<pallas_src>
import math

import jax
import jax.numpy as jnp
from jax.experimental import pallas as pl
from jax.experimental.pallas import tpu as pltpu


def _round_up(n, m):
    return ((n + m - 1) // m) * m


def vae_kernel(x_ref, eps_ref,
               w1_ref, b1_ref, w2_ref, b2_ref,
               w3_ref, b3_ref,                      # fused fc31|fc32 -> (hidden, 2*z)
               w4_ref, b4_ref, w5_ref, b5_ref, w6_ref, b6_ref,
               lat_ref, recon_ref):                 # lat = [z | mu | logvar] packed
    z_size = eps_ref.shape[-1]

    def dense(a_f32, w_ref, b_ref):
        # bf16 operands on the MXU, f32 accumulation; bias add in f32.
        return jnp.dot(a_f32.astype(jnp.bfloat16), w_ref[...],
                       preferred_element_type=jnp.float32) + b_ref[...]

    x = x_ref[...]

    # --- encoder ---
    h1 = jnp.maximum(dense(x, w1_ref, b1_ref), 0.0)        # relu(fc1(x))
    h2 = jnp.maximum(dense(h1, w2_ref, b2_ref), 0.0)       # relu(fc2(h1))
    mulogvar = dense(h2, w3_ref, b3_ref)                   # [fc31(h2) | fc32(h2)]
    mu = mulogvar[:, :z_size]
    logvar = mulogvar[:, z_size:]

    # --- reparameterize: z = mu + eps * exp(0.5 * logvar) ---
    std = jnp.exp(0.5 * logvar)
    z = mu + eps_ref[...] * std

    # --- decoder ---
    h4 = jnp.maximum(dense(z, w4_ref, b4_ref), 0.0)        # relu(fc4(z))
    h5 = jnp.maximum(dense(h4, w5_ref, b5_ref), 0.0)       # relu(fc5(h4))
    logits = dense(h5, w6_ref, b6_ref)                     # fc6(h5)
    # sigmoid: exp and reciprocal both land on the EUP slot (off the VALU critical path)
    recon = pl.reciprocal(1.0 + jnp.exp(-logits), approx=True)

    lat_ref[...] = jnp.concatenate([z, mulogvar], axis=-1)  # [z | mu | logvar]
    recon_ref[...] = recon


def vae_forward(x, eps, params, *, tile_b=256):
    """Returns (z, recon_x, mu, logvar) exactly like VAE.forward."""
    input_size = params["w1"].shape[0]
    hidden_size = params["w1"].shape[1]
    z_size = params["w31"].shape[1]

    x2 = x.reshape(-1, input_size).astype(jnp.float32)     # torch: x.view(-1, input_size)
    b = x2.shape[0]
    eps = eps.astype(jnp.float32).reshape(b, z_size)

    # Batch tile: multiple of 8 sublanes; padded batch is a multiple of the tile.
    tb = min(tile_b, _round_up(b, 8))
    b_pad = _round_up(b, tb)
    if b_pad != b:
        x2 = jnp.pad(x2, ((0, b_pad - b), (0, 0)))
        eps = jnp.pad(eps, ((0, b_pad - b), (0, 0)))
    grid = (b_pad // tb,)

    # Fuse fc31/fc32, cast weights to bf16 (halves weight DMA), keep biases f32.
    bf16 = lambda a: a.astype(jnp.bfloat16)
    w3 = jnp.concatenate([params["w31"], params["w32"]], axis=1)
    b3 = jnp.concatenate([params["b31"], params["b32"]], axis=1)
    weights = [bf16(params["w1"]), params["b1"],
               bf16(params["w2"]), params["b2"],
               bf16(w3), b3,
               bf16(params["w4"]), params["b4"],
               bf16(params["w5"]), params["b5"],
               bf16(params["w6"]), params["b6"]]

    def batch_spec(cols):
        return pl.BlockSpec((tb, cols), lambda i: (i, 0))

    def const_spec(shape):
        return pl.BlockSpec(shape, lambda i: (0,) * len(shape))

    in_specs = ([batch_spec(input_size), batch_spec(z_size)]
                + [const_spec(w.shape) for w in weights])

    out_shapes = (
        jax.ShapeDtypeStruct((b_pad, 3 * z_size), jnp.float32),   # [z | mu | logvar]
        jax.ShapeDtypeStruct((b_pad, input_size), jnp.float32),   # recon_x
    )
    out_specs = (batch_spec(3 * z_size), batch_spec(input_size))

    # Advisory cost so XLA can overlap this call with surrounding ops.
    flops = 2 * b_pad * (input_size * hidden_size + hidden_size * hidden_size
                         + hidden_size * 2 * z_size + z_size * hidden_size
                         + hidden_size * hidden_size + hidden_size * input_size)
    transcendentals = b_pad * (z_size + 2 * input_size)
    bytes_accessed = (int(x2.size) * 4 + int(eps.size) * 4
                      + sum(int(w.size) * w.dtype.itemsize for w in weights)
                      + b_pad * (3 * z_size + input_size) * 4)

    lat, recon = pl.pallas_call(
        vae_kernel,
        out_shape=out_shapes,
        grid=grid,
        in_specs=in_specs,
        out_specs=out_specs,
        compiler_params=pltpu.CompilerParams(
            dimension_semantics=("parallel",),
            vmem_limit_bytes=32 * 1024 * 1024),
        cost_estimate=pl.CostEstimate(flops=flops,
                                      transcendentals=transcendentals,
                                      bytes_accessed=bytes_accessed),
    )(x2, eps, *weights)

    z = lat[:b, :z_size]
    mu = lat[:b, z_size:2 * z_size]
    logvar = lat[:b, 2 * z_size:]
    return z, recon[:b], mu, logvar


def init_linear(key, fan_in, fan_out):
    """PyTorch nn.Linear default init (uniform +-1/sqrt(fan_in)), weight stored (in, out)."""
    kw, kb = jax.random.split(key)
    bound = 1.0 / math.sqrt(fan_in)
    w = jax.random.uniform(kw, (fan_in, fan_out), jnp.float32, -bound, bound)
    b = jax.random.uniform(kb, (1, fan_out), jnp.float32, -bound, bound)
    return w, b


def init_vae_params(key, input_size, hidden_size, z_size):
    keys = jax.random.split(key, 7)
    p = {}
    p["w1"], p["b1"] = init_linear(keys[0], input_size, hidden_size)
    p["w2"], p["b2"] = init_linear(keys[1], hidden_size, hidden_size)
    p["w31"], p["b31"] = init_linear(keys[2], hidden_size, z_size)
    p["w32"], p["b32"] = init_linear(keys[3], hidden_size, z_size)
    p["w4"], p["b4"] = init_linear(keys[4], z_size, hidden_size)
    p["w5"], p["b5"] = init_linear(keys[5], hidden_size, hidden_size)
    p["w6"], p["b6"] = init_linear(keys[6], hidden_size, input_size)
    return p


def vae_forward_ref(x, eps, params):
    """Pure-JAX f32 reference for correctness checking."""
    input_size = params["w1"].shape[0]
    x2 = x.reshape(-1, input_size).astype(jnp.float32)
    d = lambda a, w, b: a @ params[w] + params[b]
    h1 = jax.nn.relu(d(x2, "w1", "b1"))
    h2 = jax.nn.relu(d(h1, "w2", "b2"))
    mu = d(h2, "w31", "b31")
    logvar = d(h2, "w32", "b32")
    z = mu + eps * jnp.exp(0.5 * logvar)
    h4 = jax.nn.relu(d(z, "w4", "b4"))
    h5 = jax.nn.relu(d(h4, "w5", "b5"))
    recon = jax.nn.sigmoid(d(h5, "w6", "b6"))
    return z, recon, mu, logvar


if __name__ == "__main__":
    # small shapes consistent with the module's forward (x.view(-1, input_size))
    B, C, H, W = 2, 4, 16, 16
    input_size = C * H * W          # 1024
    hidden_size = 128
    z_size = 32

    key = jax.random.PRNGKey(0)
    k_x, k_eps, k_p = jax.random.split(key, 3)

    x = jax.random.uniform(k_x, (B, C, H, W), jnp.float32)          # "image" input in NCHW
    # torch.randn_like(std) is an in-module RNG; here the noise is an explicit input.
    eps = jax.random.normal(k_eps, (B, z_size), jnp.float32)
    params = init_vae_params(k_p, input_size, hidden_size, z_size)

    z, recon, mu, logvar = vae_forward(x, eps, params)
    jax.block_until_ready((z, recon, mu, logvar))

    # sanity check against pure-JAX f32 reference (tolerances loosened for bf16 matmul operands)
    z_r, recon_r, mu_r, logvar_r = vae_forward_ref(x, eps, params)
    assert jnp.allclose(z, z_r, atol=5e-2, rtol=5e-2)
    assert jnp.allclose(recon, recon_r, atol=5e-2, rtol=5e-2)
    assert jnp.allclose(mu, mu_r, atol=5e-2, rtol=5e-2)
    assert jnp.allclose(logvar, logvar_r, atol=5e-2, rtol=5e-2)

    assert z.shape == (B, z_size) and recon.shape == (B, input_size)
    assert mu.shape == (B, z_size) and logvar.shape == (B, z_size)
    print("KERNEL_OK")
</pallas_src>

<mosaic_0001>
module attributes {stable_mosaic.version = 11 : i64} {
  func.func @vae_kernel(%arg0: i32, %arg1: memref<8x1024xf32, #tpu.memory_space<vmem>>, %arg2: memref<8x32xf32, #tpu.memory_space<vmem>>, %arg3: memref<1024x128xbf16, #tpu.memory_space<vmem>>, %arg4: memref<1x128xf32, #tpu.memory_space<vmem>>, %arg5: memref<128x128xbf16, #tpu.memory_space<vmem>>, %arg6: memref<1x128xf32, #tpu.memory_space<vmem>>, %arg7: memref<128x64xbf16, #tpu.memory_space<vmem>>, %arg8: memref<1x64xf32, #tpu.memory_space<vmem>>, %arg9: memref<32x128xbf16, #tpu.memory_space<vmem>>, %arg10: memref<1x128xf32, #tpu.memory_space<vmem>>, %arg11: memref<128x128xbf16, #tpu.memory_space<vmem>>, %arg12: memref<1x128xf32, #tpu.memory_space<vmem>>, %arg13: memref<128x1024xbf16, #tpu.memory_space<vmem>>, %arg14: memref<1x1024xf32, #tpu.memory_space<vmem>>, %arg15: memref<8x96xf32, #tpu.memory_space<vmem>>, %arg16: memref<8x1024xf32, #tpu.memory_space<vmem>>) attributes {dimension_semantics = [#tpu.dimension_semantics<parallel>], iteration_bounds = array<i64: 1>, scalar_prefetch = 0 : i64, scratch_operands = 0 : i64, tpu.core_type = #tpu.core_type<tc>, window_params = [{transform_indices = @transform_0, window_bounds = array<i64: 8, 1024>}, {transform_indices = @transform_1, window_bounds = array<i64: 8, 32>}, {pipeline_mode = #tpu.pipeline_mode<synchronous>, transform_indices = @transform_2, window_bounds = array<i64: 1024, 128>}, {pipeline_mode = #tpu.pipeline_mode<synchronous>, transform_indices = @transform_3, window_bounds = array<i64: 1, 128>}, {pipeline_mode = #tpu.pipeline_mode<synchronous>, transform_indices = @transform_4, window_bounds = array<i64: 128, 128>}, {pipeline_mode = #tpu.pipeline_mode<synchronous>, transform_indices = @transform_5, window_bounds = array<i64: 1, 128>}, {pipeline_mode = #tpu.pipeline_mode<synchronous>, transform_indices = @transform_6, window_bounds = array<i64: 128, 64>}, {pipeline_mode = #tpu.pipeline_mode<synchronous>, transform_indices = @transform_7, window_bounds = array<i64: 1, 64>}, {pipeline_mode = #tpu.pipeline_mode<synchronous>, transform_indices = @transform_8, window_bounds = array<i64: 32, 128>}, {pipeline_mode = #tpu.pipeline_mode<synchronous>, transform_indices = @transform_9, window_bounds = array<i64: 1, 128>}, {pipeline_mode = #tpu.pipeline_mode<synchronous>, transform_indices = @transform_10, window_bounds = array<i64: 128, 128>}, {pipeline_mode = #tpu.pipeline_mode<synchronous>, transform_indices = @transform_11, window_bounds = array<i64: 1, 128>}, {pipeline_mode = #tpu.pipeline_mode<synchronous>, transform_indices = @transform_12, window_bounds = array<i64: 128, 1024>}, {pipeline_mode = #tpu.pipeline_mode<synchronous>, transform_indices = @transform_13, window_bounds = array<i64: 1, 1024>}, {transform_indices = @transform_14, window_bounds = array<i64: 8, 96>}, {transform_indices = @transform_15, window_bounds = array<i64: 8, 1024>}]} {
    %c0 = arith.constant 0 : index
    %c0_0 = arith.constant 0 : index
    %0 = vector.load %arg1[%c0, %c0_0] : memref<8x1024xf32, #tpu.memory_space<vmem>>, vector<8x1024xf32>
    %1 = arith.truncf %0 : vector<8x1024xf32> to vector<8x1024xbf16>
    %c0_1 = arith.constant 0 : index
    %c0_2 = arith.constant 0 : index
    %2 = vector.load %arg3[%c0_1, %c0_2] : memref<1024x128xbf16, #tpu.memory_space<vmem>>, vector<1024x128xbf16>
    %cst = arith.constant dense<0.000000e+00> : vector<8x128xf32>
    %3 = tpu.matmul %1, %2, %cst {dimension_numbers = #tpu.dot_dimension_numbers<[1], [0], [0], [1], [0, 0, 1, 1], [], []>} : vector<8x1024xbf16>, vector<1024x128xbf16>, vector<8x128xf32> -> vector<8x128xf32>
    %c0_3 = arith.constant 0 : index
    %c0_4 = arith.constant 0 : index
    %4 = vector.load %arg4[%c0_3, %c0_4] : memref<1x128xf32, #tpu.memory_space<vmem>>, vector<1x128xf32>
    %5 = vector.broadcast %4 : vector<1x128xf32> to vector<8x128xf32>
    %6 = arith.addf %3, %5 : vector<8x128xf32>
    %cst_5 = arith.constant 0.000000e+00 : f32
    %7 = vector.broadcast %cst_5 : f32 to vector<8x128xf32>
    %8 = arith.maximumf %6, %7 : vector<8x128xf32>
    %9 = arith.truncf %8 : vector<8x128xf32> to vector<8x128xbf16>
    %c0_6 = arith.constant 0 : index
    %c0_7 = arith.constant 0 : index
    %10 = vector.load %arg5[%c0_6, %c0_7] : memref<128x128xbf16, #tpu.memory_space<vmem>>, vector<128x128xbf16>
    %cst_8 = arith.constant dense<0.000000e+00> : vector<8x128xf32>
    %11 = tpu.matmul %9, %10, %cst_8 {dimension_numbers = #tpu.dot_dimension_numbers<[1], [0], [0], [1], [0, 0, 1, 1], [], []>} : vector<8x128xbf16>, vector<128x128xbf16>, vector<8x128xf32> -> vector<8x128xf32>
    %c0_9 = arith.constant 0 : index
    %c0_10 = arith.constant 0 : index
    %12 = vector.load %arg6[%c0_9, %c0_10] : memref<1x128xf32, #tpu.memory_space<vmem>>, vector<1x128xf32>
    %13 = vector.broadcast %12 : vector<1x128xf32> to vector<8x128xf32>
    %14 = arith.addf %11, %13 : vector<8x128xf32>
    %cst_11 = arith.constant 0.000000e+00 : f32
    %15 = vector.broadcast %cst_11 : f32 to vector<8x128xf32>
    %16 = arith.maximumf %14, %15 : vector<8x128xf32>
    %17 = arith.truncf %16 : vector<8x128xf32> to vector<8x128xbf16>
    %c0_12 = arith.constant 0 : index
    %c0_13 = arith.constant 0 : index
    %18 = vector.load %arg7[%c0_12, %c0_13] : memref<128x64xbf16, #tpu.memory_space<vmem>>, vector<128x64xbf16>
    %cst_14 = arith.constant dense<0.000000e+00> : vector<8x64xf32>
    %19 = tpu.matmul %17, %18, %cst_14 {dimension_numbers = #tpu.dot_dimension_numbers<[1], [0], [0], [1], [0, 0, 1, 1], [], []>} : vector<8x128xbf16>, vector<128x64xbf16>, vector<8x64xf32> -> vector<8x64xf32>
    %c0_15 = arith.constant 0 : index
    %c0_16 = arith.constant 0 : index
    %20 = vector.load %arg8[%c0_15, %c0_16] : memref<1x64xf32, #tpu.memory_space<vmem>>, vector<1x64xf32>
    %21 = vector.broadcast %20 : vector<1x64xf32> to vector<8x64xf32>
    %22 = arith.addf %19, %21 : vector<8x64xf32>
    %23 = vector.extract_strided_slice %22 {offsets = [0, 0], sizes = [8, 32], strides = [1, 1]} : vector<8x64xf32> to vector<8x32xf32>
    %24 = vector.extract_strided_slice %22 {offsets = [0, 32], sizes = [8, 32], strides = [1, 1]} : vector<8x64xf32> to vector<8x32xf32>
    %cst_17 = arith.constant 5.000000e-01 : f32
    %25 = vector.broadcast %cst_17 : f32 to vector<8x32xf32>
    %26 = arith.mulf %25, %24 : vector<8x32xf32>
    %27 = math.exp %26 : vector<8x32xf32>
    %c0_18 = arith.constant 0 : index
    %c0_19 = arith.constant 0 : index
    %28 = vector.load %arg2[%c0_18, %c0_19] : memref<8x32xf32, #tpu.memory_space<vmem>>, vector<8x32xf32>
    %29 = arith.mulf %28, %27 : vector<8x32xf32>
    %30 = arith.addf %23, %29 : vector<8x32xf32>
    %31 = arith.truncf %30 : vector<8x32xf32> to vector<8x32xbf16>
    %c0_20 = arith.constant 0 : index
    %c0_21 = arith.constant 0 : index
    %32 = vector.load %arg9[%c0_20, %c0_21] : memref<32x128xbf16, #tpu.memory_space<vmem>>, vector<32x128xbf16>
    %cst_22 = arith.constant dense<0.000000e+00> : vector<8x128xf32>
    %33 = tpu.matmul %31, %32, %cst_22 {dimension_numbers = #tpu.dot_dimension_numbers<[1], [0], [0], [1], [0, 0, 1, 1], [], []>} : vector<8x32xbf16>, vector<32x128xbf16>, vector<8x128xf32> -> vector<8x128xf32>
    %c0_23 = arith.constant 0 : index
    %c0_24 = arith.constant 0 : index
    %34 = vector.load %arg10[%c0_23, %c0_24] : memref<1x128xf32, #tpu.memory_space<vmem>>, vector<1x128xf32>
    %35 = vector.broadcast %34 : vector<1x128xf32> to vector<8x128xf32>
    %36 = arith.addf %33, %35 : vector<8x128xf32>
    %cst_25 = arith.constant 0.000000e+00 : f32
    %37 = vector.broadcast %cst_25 : f32 to vector<8x128xf32>
    %38 = arith.maximumf %36, %37 : vector<8x128xf32>
    %39 = arith.truncf %38 : vector<8x128xf32> to vector<8x128xbf16>
    %c0_26 = arith.constant 0 : index
    %c0_27 = arith.constant 0 : index
    %40 = vector.load %arg11[%c0_26, %c0_27] : memref<128x128xbf16, #tpu.memory_space<vmem>>, vector<128x128xbf16>
    %cst_28 = arith.constant dense<0.000000e+00> : vector<8x128xf32>
    %41 = tpu.matmul %39, %40, %cst_28 {dimension_numbers = #tpu.dot_dimension_numbers<[1], [0], [0], [1], [0, 0, 1, 1], [], []>} : vector<8x128xbf16>, vector<128x128xbf16>, vector<8x128xf32> -> vector<8x128xf32>
    %c0_29 = arith.constant 0 : index
    %c0_30 = arith.constant 0 : index
    %42 = vector.load %arg12[%c0_29, %c0_30] : memref<1x128xf32, #tpu.memory_space<vmem>>, vector<1x128xf32>
    %43 = vector.broadcast %42 : vector<1x128xf32> to vector<8x128xf32>
    %44 = arith.addf %41, %43 : vector<8x128xf32>
    %cst_31 = arith.constant 0.000000e+00 : f32
    %45 = vector.broadcast %cst_31 : f32 to vector<8x128xf32>
    %46 = arith.maximumf %44, %45 : vector<8x128xf32>
    %47 = arith.truncf %46 : vector<8x128xf32> to vector<8x128xbf16>
    %c0_32 = arith.constant 0 : index
    %c0_33 = arith.constant 0 : index
    %48 = vector.load %arg13[%c0_32, %c0_33] : memref<128x1024xbf16, #tpu.memory_space<vmem>>, vector<128x1024xbf16>
    %cst_34 = arith.constant dense<0.000000e+00> : vector<8x1024xf32>
    %49 = tpu.matmul %47, %48, %cst_34 {dimension_numbers = #tpu.dot_dimension_numbers<[1], [0], [0], [1], [0, 0, 1, 1], [], []>} : vector<8x128xbf16>, vector<128x1024xbf16>, vector<8x1024xf32> -> vector<8x1024xf32>
    %c0_35 = arith.constant 0 : index
    %c0_36 = arith.constant 0 : index
    %50 = vector.load %arg14[%c0_35, %c0_36] : memref<1x1024xf32, #tpu.memory_space<vmem>>, vector<1x1024xf32>
    %51 = vector.broadcast %50 : vector<1x1024xf32> to vector<8x1024xf32>
    %52 = arith.addf %49, %51 : vector<8x1024xf32>
    %cst_37 = arith.constant 0.000000e+00 : f32
    %53 = vector.broadcast %cst_37 : f32 to vector<8x1024xf32>
    %54 = arith.subf %53, %52 : vector<8x1024xf32>
    %55 = math.exp %54 : vector<8x1024xf32>
    %cst_38 = arith.constant 1.000000e+00 : f32
    %56 = vector.broadcast %cst_38 : f32 to vector<8x1024xf32>
    %57 = arith.addf %56, %55 : vector<8x1024xf32>
    %58 = tpu.reciprocal %57 {approx = true} : vector<8x1024xf32> -> vector<8x1024xf32>
    %59 = tpu.concatenate %30, %22 in 1 : vector<8x32xf32>, vector<8x64xf32> -> vector<8x96xf32>
    %c0_39 = arith.constant 0 : index
    %c0_40 = arith.constant 0 : index
    %60 = vector.load %arg15[%c0_39, %c0_40] : memref<8x96xf32, #tpu.memory_space<vmem>>, vector<8x96xf32>
    tpu.vector_store %arg15[%c0_39, %c0_40], %59 {strides = array<i32>} : memref<8x96xf32, #tpu.memory_space<vmem>>, vector<8x96xf32>,
    %c0_41 = arith.constant 0 : index
    %c0_42 = arith.constant 0 : index
    %61 = vector.load %arg16[%c0_41, %c0_42] : memref<8x1024xf32, #tpu.memory_space<vmem>>, vector<8x1024xf32>
    tpu.vector_store %arg16[%c0_41, %c0_42], %58 {strides = array<i32>} : memref<8x1024xf32, #tpu.memory_space<vmem>>, vector<8x1024xf32>,
    return
  }
  func.func @transform_0(%arg0: i32) -> (i32, i32) {
    %c0_i32 = arith.constant 0 : i32
    %c0_i32_0 = arith.constant 0 : i32
    return %arg0, %c0_i32 : i32, i32
  }
  func.func @transform_1(%arg0: i32) -> (i32, i32) {
    %c0_i32 = arith.constant 0 : i32
    %c0_i32_0 = arith.constant 0 : i32
    return %arg0, %c0_i32 : i32, i32
  }
  func.func @transform_2(%arg0: i32) -> (i32, i32) {
    %c0_i32 = arith.constant 0 : i32
    %c0_i32_0 = arith.constant 0 : i32
    %c0_i32_1 = arith.constant 0 : i32
    return %c0_i32, %c0_i32_0 : i32, i32
  }
  func.func @transform_3(%arg0: i32) -> (i32, i32) {
    %c0_i32 = arith.constant 0 : i32
    %c0_i32_0 = arith.constant 0 : i32
    %c0_i32_1 = arith.constant 0 : i32
    return %c0_i32, %c0_i32_0 : i32, i32
  }
  func.func @transform_4(%arg0: i32) -> (i32, i32) {
    %c0_i32 = arith.constant 0 : i32
    %c0_i32_0 = arith.constant 0 : i32
    %c0_i32_1 = arith.constant 0 : i32
    return %c0_i32, %c0_i32_0 : i32, i32
  }
  func.func @transform_5(%arg0: i32) -> (i32, i32) {
    %c0_i32 = arith.constant 0 : i32
    %c0_i32_0 = arith.constant 0 : i32
    %c0_i32_1 = arith.constant 0 : i32
    return %c0_i32, %c0_i32_0 : i32, i32
  }
  func.func @transform_6(%arg0: i32) -> (i32, i32) {
    %c0_i32 = arith.constant 0 : i32
    %c0_i32_0 = arith.constant 0 : i32
    %c0_i32_1 = arith.constant 0 : i32
    return %c0_i32, %c0_i32_0 : i32, i32
  }
  func.func @transform_7(%arg0: i32) -> (i32, i32) {
    %c0_i32 = arith.constant 0 : i32
    %c0_i32_0 = arith.constant 0 : i32
    %c0_i32_1 = arith.constant 0 : i32
    return %c0_i32, %c0_i32_0 : i32, i32
  }
  func.func @transform_8(%arg0: i32) -> (i32, i32) {
    %c0_i32 = arith.constant 0 : i32
    %c0_i32_0 = arith.constant 0 : i32
    %c0_i32_1 = arith.constant 0 : i32
    return %c0_i32, %c0_i32_0 : i32, i32
  }
  func.func @transform_9(%arg0: i32) -> (i32, i32) {
    %c0_i32 = arith.constant 0 : i32
    %c0_i32_0 = arith.constant 0 : i32
    %c0_i32_1 = arith.constant 0 : i32
    return %c0_i32, %c0_i32_0 : i32, i32
  }
  func.func @transform_10(%arg0: i32) -> (i32, i32) {
    %c0_i32 = arith.constant 0 : i32
    %c0_i32_0 = arith.constant 0 : i32
    %c0_i32_1 = arith.constant 0 : i32
    return %c0_i32, %c0_i32_0 : i32, i32
  }
  func.func @transform_11(%arg0: i32) -> (i32, i32) {
    %c0_i32 = arith.constant 0 : i32
    %c0_i32_0 = arith.constant 0 : i32
    %c0_i32_1 = arith.constant 0 : i32
    return %c0_i32, %c0_i32_0 : i32, i32
  }
  func.func @transform_12(%arg0: i32) -> (i32, i32) {
    %c0_i32 = arith.constant 0 : i32
    %c0_i32_0 = arith.constant 0 : i32
    %c0_i32_1 = arith.constant 0 : i32
    return %c0_i32, %c0_i32_0 : i32, i32
  }
  func.func @transform_13(%arg0: i32) -> (i32, i32) {
    %c0_i32 = arith.constant 0 : i32
    %c0_i32_0 = arith.constant 0 : i32
    %c0_i32_1 = arith.constant 0 : i32
    return %c0_i32, %c0_i32_0 : i32, i32
  }
  func.func @transform_14(%arg0: i32) -> (i32, i32) {
    %c0_i32 = arith.constant 0 : i32
    %c0_i32_0 = arith.constant 0 : i32
    return %arg0, %c0_i32 : i32, i32
  }
  func.func @transform_15(%arg0: i32) -> (i32, i32) {
    %c0_i32 = arith.constant 0 : i32
    %c0_i32_0 = arith.constant 0 : i32
    return %arg0, %c0_i32 : i32, i32
  }
}

</mosaic_0001>

<bundles_post_ra>
// kernel: tpu_custom_call.1
= control target key start
LH: loop header
LB: loop body
LE: loop exit
PB: predicated region body
PF: predicated region fallthrough
CT: control target
= control target key end

     0   :  { %21 = vsyncpa [#allocation3], 0  ;;  %s2807_s0 = inlined_call_operand.vmem [shape: f32[8,1024], index: 0, kind: input, shape index: {}]   ;;  %s2808_s1 = inlined_call_operand.vmem [shape: f32[8,32], index: 1, kind: input, shape index: {}]   ;;  %s2809_s2 = inlined_call_operand.hbm [shape: bf16[1024,128], index: 2, kind: input, shape index: {}]   ;;  %s2810_s3 = inlined_call_operand.vmem [shape: f32[1,128], index: 3, kind: input, shape index: {}]   ;;  %s2811_s4 = inlined_call_operand.hbm [shape: bf16[128,128], index: 4, kind: input, shape index: {}]   ;;  %s2812_s5 = inlined_call_operand.vmem [shape: f32[1,128], index: 5, kind: input, shape index: {}]   ;;  %s2813_s6 = inlined_call_operand.vmem [shape: bf16[128,64], index: 6, kind: input, shape index: {}]   ;;  %s2814_s7 = inlined_call_operand.vmem [shape: f32[1,64], index: 7, kind: input, shape index: {}]   ;;  %s2815_s8 = inlined_call_operand.vmem [shape: bf16[32,128], index: 8, kind: input, shape index: {}]   ;;  %s2816_s9 = inlined_call_operand.vmem [shape: f32[1,128], index: 9, kind: input, shape index: {}]   ;;  %s2817_s10 = inlined_call_operand.hbm [shape: bf16[128,128], index: 10, kind: input, shape index: {}]   ;;  %s2818_s11 = inlined_call_operand.vmem [shape: f32[1,128], index: 11, kind: input, shape index: {}]   ;;  %s2819_s12 = inlined_call_operand.hbm [shape: bf16[128,1024], index: 12, kind: input, shape index: {}]   ;;  %s2820_s13 = inlined_call_operand.vmem [shape: f32[1,1024], index: 13, kind: input, shape index: {}]   ;;  %s2821_s14 = inlined_call_operand.hbm [shape: f32[8,96], index: 14, kind: output, shape index: {0}]   ;;  %s2822_s15 = inlined_call_operand.hbm [shape: f32[8,1024], index: 15, kind: output, shape index: {1}]  }
   0x1   :  { %22 = vsyncpa [#allocation6], 0 }
   0x2   :  { %23 = vsyncpa [#allocation9], 0 }
   0x3   :  { %24 = vsyncpa [#allocation4], 0 }
   0x4   :  { %25 = vsyncpa [#allocation12], 0  ;;  %s49_s20 = sshll.u32 %s2811_s4, 4  ;;  %s2621_s21 = smov [#allocation5]   ;;  %s50_s20 = int_to_ptr.hbm [resolvable:$true] %s49_s20 }
   0x5   :  { %s51_s22 = sshll.u32 %s2621_s21, 4  ;;  %s34_s25 = sshll.u32 %s2809_s2, 4  ;;  %s52_s22 = int_to_ptr.vmem [resolvable:$true] %s51_s22  ;;  %s35_s25 = int_to_ptr.hbm [resolvable:$true] %s34_s25 }
   0x6   :  { %s2622_s26 = smov 64   ;;  %s2623_s27 = smov 4  }
   0x7   :  { %57 = dma.hbm_to_vmem [thread:$0]  %s50_s20, 1024, %s52_s22, [#allocation6], %s2622_s26, %s2622_s26, %s2623_s27  }
   0x8   :  { %s2624_s28 = smov [#allocation2]   ;;  %s72_s17 = sshll.u32 %s2817_s10, 4  ;;  %s73_s17 = int_to_ptr.hbm [resolvable:$true] %s72_s17 }
   0x9   :  { %s36_s29 = sshll.u32 %s2624_s28, 4  ;;  %s87_s19 = sshll.u32 %s2819_s12, 4  ;;  %s37_s29 = int_to_ptr.vmem [resolvable:$true] %s36_s29  ;;  %s88_s19 = int_to_ptr.hbm [resolvable:$true] %s87_s19 }
   0xa   :  { %42 = dma.hbm_to_vmem [thread:$0]  %s35_s25, 8192, %s37_s29, [#allocation3], %s2622_s26, %s2622_s26, %s2623_s27  }
   0xb   :  { %s2625_s21 = smov [#allocation7]   ;;  %s2626_s2 = smov [#allocation8]  }
   0xc   :  { %s74_s23 = sshll.u32 %s2625_s21, 4  ;;  %s89_s20 = sshll.u32 %s2626_s2, 4  ;;  %s75_s23 = int_to_ptr.vmem [resolvable:$true] %s74_s23  ;;  %s90_s20 = int_to_ptr.vmem [resolvable:$true] %s89_s20 }
   0xd   :  { %80 = dma.hbm_to_vmem [thread:$0]  %s73_s17, 1024, %s75_s23, [#allocation6], %s2622_s26, %s2622_s26, %s2623_s27  }
   0xe   :  { %s2627_s22 = smov 512   ;;  %s2628_s24 = smov 32  }
   0xf   :  { %95 = dma.hbm_to_vmem [thread:$0]  %s88_s19, 8192, %s90_s20, [#allocation9], %s2627_s22, %s2627_s22, %s2628_s24  }
  0x10   :  { %2611 = dma.done.wait [#allocation3], 8192  }
  0x11   :  { %2612 = vsyncadd [#allocation3], 4294959104 }
  0x12   :  { %2613 = dma.done.wait [#allocation6], 2048  }
  0x13   :  { %2614 = vsyncadd [#allocation6], 4294965248 }
  0x14   :  { %2615 = dma.done.wait [#allocation9], 8192  }
  0x15   :  { %2616 = vsyncadd [#allocation9], 4294959104  ;;  %v2270_v0 = vld [vmem:[#allocation2 + $0x38] sm:$0xff]  ;;  %v2269_v4 = vld [vmem:[#allocation2 + $0x30] sm:$0xff]  ;;  %vm948_vm0 = vcmask 261120   ;;  %vm1601_vm1 = vcmask 785408  }
  0x16   :  { %v2278_v1 = vld [vmem:[#allocation2 + $0x78] sm:$0xff]  ;;  %647 = vmatpush.bf16.msra.mxu0 %v2270_v0  ;;  %v2277_v5 = vld [vmem:[#allocation2 + $0x70] sm:$0xff]  ;;  %v2268_v8 = vld [vmem:[#allocation2 + $0x28] sm:$0xff]  ;;  %s2630_s26 = smov [#allocation10]   ;;  %s1618_s29 = sshll.u32 %s2821_s14, 4  ;;  %s1619_s29 = int_to_ptr.hbm [resolvable:$true] %s1618_s29 }
  0x17   :  { %v2286_v2 = vld [vmem:[#allocation2 + $0xb8] sm:$0xff]  ;;  %660 = vmatpush.bf16.msra.mxu1 %v2278_v1  ;;  %v2285_v6 = vld [vmem:[#allocation2 + $0xb0] sm:$0xff]  ;;  %v2276_v9 = vld [vmem:[#allocation2 + $0x68] sm:$0xff]  ;;  %s1616_s27 = sshll.u32 %s2630_s26, 4  ;;  %s1629_s4 = sshll.u32 %s2822_s15, 4  ;;  %s1617_s27 = int_to_ptr.vmem [resolvable:$true] %s1616_s27  ;;  %s1630_s4 = int_to_ptr.hbm [resolvable:$true] %s1629_s4 }
  0x18   :  { %v2294_v3 = vld [vmem:[#allocation2 + $0xf8] sm:$0xff]  ;;  %673 = vmatpush.bf16.msra.mxu2 %v2286_v2  ;;  %v2293_v7 = vld [vmem:[#allocation2 + $0xf0] sm:$0xff]  ;;  %v2284_v10 = vld [vmem:[#allocation2 + $0xa8] sm:$0xff] }
  0x19   :  { %686 = vmatpush.bf16.msra.mxu3 %v2294_v3  ;;  %v2292_v11 = vld [vmem:[#allocation2 + $0xe8] sm:$0xff]  ;;  %v2267_v12 = vld [vmem:[#allocation2 + $0x20] sm:$0xff]  ;;  %v2266_v16 = vld [vmem:[#allocation2 + $0x18] sm:$0xff] }
  0x1a   :  { %648 = vmatpush.bf16.msra.mxu0 %v2269_v4  ;;  %v2275_v13 = vld [vmem:[#allocation2 + $0x60] sm:$0xff]  ;;  %v2274_v17 = vld [vmem:[#allocation2 + $0x58] sm:$0xff]  ;;  %v2265_v20 = vld [vmem:[#allocation2 + $0x10] sm:$0xff] }
  0x1b   :  { %661 = vmatpush.bf16.msra.mxu1 %v2277_v5  ;;  %v2283_v14 = vld [vmem:[#allocation2 + $0xa0] sm:$0xff]  ;;  %v2282_v18 = vld [vmem:[#allocation2 + $0x98] sm:$0xff]  ;;  %v2273_v21 = vld [vmem:[#allocation2 + $0x50] sm:$0xff] }
  0x1c   :  { %674 = vmatpush.bf16.msra.mxu2 %v2285_v6  ;;  %v2291_v15 = vld [vmem:[#allocation2 + $0xe0] sm:$0xff]  ;;  %v2290_v19 = vld [vmem:[#allocation2 + $0xd8] sm:$0xff]  ;;  %v2281_v22 = vld [vmem:[#allocation2 + $0x90] sm:$0xff] }
  0x1d   :  { %687 = vmatpush.bf16.msra.mxu3 %v2293_v7  ;;  %v2289_v23 = vld [vmem:[#allocation2 + $0xd0] sm:$0xff]  ;;  %v2264_v24 = vld [vmem:[#allocation2 + $0x8] sm:$0xff]  ;;  %v2263_v28 = vld [vmem:[#allocation2] sm:$0xff] }
  0x1e   :  { %649 = vmatpush.bf16.msra.mxu0 %v2268_v8  ;;  %v2272_v25 = vld [vmem:[#allocation2 + $0x48] sm:$0xff]  ;;  %v2271_v29 = vld [vmem:[#allocation2 + $0x40] sm:$0xff]  ;;  %v2302_v32 = vld [vmem:[#allocation2 + $0x138] sm:$0xff] }
  0x1f   :  { %662 = vmatpush.bf16.msra.mxu1 %v2276_v9  ;;  %v2280_v26 = vld [vmem:[#allocation2 + $0x88] sm:$0xff]  ;;  %v2279_v30 = vld [vmem:[#allocation2 + $0x80] sm:$0xff]  ;;  %v117_v33 = vld [vmem:[%s2807_s0 + $0x10] sm:$0xff] }
  0x20   :  { %675 = vmatpush.bf16.msra.mxu2 %v2284_v10  ;;  %v2288_v27 = vld [vmem:[#allocation2 + $0xc8] sm:$0xff]  ;;  %v2287_v31 = vld [vmem:[#allocation2 + $0xc0] sm:$0xff]  ;;  %v2310_v35 = vld [vmem:[#allocation2 + $0x178] sm:$0xff]  ;;  %v125_v40 = vpack.c.bf16 %v117_v33, %v117_v33 }
  0x21   :  { %688 = vmatpush.bf16.msra.mxu3 %v2292_v11  ;;  %v115_v34 = vld [vmem:[%s2807_s0] sm:$0xff]  ;;  %v118_v36 = vld [vmem:[%s2807_s0 + $0x18] sm:$0xff]  ;;  %v116_v37 = vld [vmem:[%s2807_s0 + $0x8] sm:$0xff] }
  0x22   :  { %650 = vmatpush.bf16.msra.mxu0 %v2267_v12  ;;  %v2318_v38 = vld [vmem:[#allocation2 + $0x1b8] sm:$0xff]  ;;  %v123_v41 = vpack.c.bf16 %v115_v34, %v115_v34  ;;  %v126_v42 = vpack.c.bf16 %v118_v36, %v118_v36  ;;  %v124_v43 = vpack.c.bf16 %v116_v37, %v116_v37  ;;  %v2301_v44 = vld [vmem:[#allocation2 + $0x130] sm:$0xff]  ;;  %v2300_v48 = vld [vmem:[#allocation2 + $0x128] sm:$0xff] }
  0x23   :  { %663 = vmatpush.bf16.msra.mxu1 %v2275_v13  ;;  %v2326_v39 = vld [vmem:[#allocation2 + $0x1f8] sm:$0xff]  ;;  %v2309_v45 = vld [vmem:[#allocation2 + $0x170] sm:$0xff]  ;;  %v2308_v49 = vld [vmem:[#allocation2 + $0x168] sm:$0xff] }
  0x24   :  { %676 = vmatpush.bf16.msra.mxu2 %v2283_v14  ;;  %v2317_v46 = vld [vmem:[#allocation2 + $0x1b0] sm:$0xff]  ;;  %v2316_v50 = vld [vmem:[#allocation2 + $0x1a8] sm:$0xff]  ;;  %v2299_v52 = vld [vmem:[#allocation2 + $0x120] sm:$0xff] }
  0x25   :  { %689 = vmatpush.bf16.msra.mxu3 %v2291_v15  ;;  %v2325_v47 = vld [vmem:[#allocation2 + $0x1f0] sm:$0xff]  ;;  %v2324_v51 = vld [vmem:[#allocation2 + $0x1e8] sm:$0xff]  ;;  %v2307_v53 = vld [vmem:[#allocation2 + $0x160] sm:$0xff] }
  0x26   :  { %651 = vmatpush.bf16.msra.mxu0 %v2266_v16  ;;  %v2315_v54 = vld [vmem:[#allocation2 + $0x1a0] sm:$0xff]  ;;  %v2298_v56 = vld [vmem:[#allocation2 + $0x118] sm:$0xff]  ;;  %v2297_v60 = vld [vmem:[#allocation2 + $0x110] sm:$0xff] }
  0x27   :  { %664 = vmatpush.bf16.msra.mxu1 %v2274_v17  ;;  %v2323_v55 = vld [vmem:[#allocation2 + $0x1e0] sm:$0xff]  ;;  %v2306_v57 = vld [vmem:[#allocation2 + $0x158] sm:$0xff]  ;;  %v2305_v61 = vld [vmem:[#allocation2 + $0x150] sm:$0xff] }
  0x28   :  { %677 = vmatpush.bf16.msra.mxu2 %v2282_v18  ;;  %v2314_v58 = vld [vmem:[#allocation2 + $0x198] sm:$0xff]  ;;  %v2313_v62 = vld [vmem:[#allocation2 + $0x190] sm:$0xff]  ;;  %v2296_v0 = vld [vmem:[#allocation2 + $0x108] sm:$0xff] }
  0x29   :  { %690 = vmatpush.bf16.msra.mxu3 %v2290_v19  ;;  %v2322_v59 = vld [vmem:[#allocation2 + $0x1d8] sm:$0xff]  ;;  %v2321_v63 = vld [vmem:[#allocation2 + $0x1d0] sm:$0xff]  ;;  %v2304_v1 = vld [vmem:[#allocation2 + $0x148] sm:$0xff] }
  0x2a   :  { %652 = vmatpush.bf16.msra.mxu0 %v2265_v20  ;;  %v2312_v2 = vld [vmem:[#allocation2 + $0x188] sm:$0xff]  ;;  %v2295_v4 = vld [vmem:[#allocation2 + $0x100] sm:$0xff]  ;;  %v121_v10 = vld [vmem:[%s2807_s0 + $0x30] sm:$0xff] }
  0x2b   :  { %665 = vmatpush.bf16.msra.mxu1 %v2273_v21  ;;  %v2320_v3 = vld [vmem:[#allocation2 + $0x1c8] sm:$0xff]  ;;  %v2303_v5 = vld [vmem:[#allocation2 + $0x140] sm:$0xff]  ;;  %v122_v11 = vld [vmem:[%s2807_s0 + $0x38] sm:$0xff]  ;;  %v129_v14 = vpack.c.bf16 %v121_v10, %v121_v10 }
  0x2c   :  { %678 = vmatpush.bf16.msra.mxu2 %v2281_v22  ;;  %v2311_v6 = vld [vmem:[#allocation2 + $0x180] sm:$0xff]  ;;  %v120_v8 = vld [vmem:[%s2807_s0 + $0x28] sm:$0xff]  ;;  %v130_v15 = vpack.c.bf16 %v122_v11, %v122_v11  ;;  %v2334_v16 = vld [vmem:[#allocation5 + $0x38] sm:$0xff] }
  0x2d   :  { %691 = vmatpush.bf16.msra.mxu3 %v2289_v23  ;;  %v119_v7 = vld [vmem:[%s2807_s0 + $0x20] sm:$0xff]  ;;  %v128_v13 = vpack.c.bf16 %v120_v8, %v120_v8  ;;  %v2333_v17 = vld [vmem:[#allocation5 + $0x30] sm:$0xff]  ;;  %v2332_v18 = vld [vmem:[#allocation5 + $0x28] sm:$0xff] }
  0x2e   :  { %653 = vmatpush.bf16.msra.mxu0 %v2264_v24  ;;  %v2319_v9 = vld [vmem:[#allocation2 + $0x1c0] sm:$0xff]  ;;  %v127_v12 = vpack.c.bf16 %v119_v7, %v119_v7  ;;  %v2330_v20 = vld [vmem:[#allocation5 + $0x18] sm:$0xff]  ;;  %v2329_v22 = vld [vmem:[#allocation5 + $0x10] sm:$0xff] }
  0x2f   :  { %666 = vmatpush.bf16.msra.mxu1 %v2272_v25  ;;  %v2331_v19 = vld [vmem:[#allocation5 + $0x20] sm:$0xff]  ;;  %v2328_v24 = vld [vmem:[#allocation5 + $0x8] sm:$0xff]  ;;  %v2341_v34 = vld [vmem:[%s2813_s6 + $0x30] sm:$0xff] }
  0x30   :  { %679 = vmatpush.bf16.msra.mxu2 %v2280_v26  ;;  %v2340_v36 = vld [vmem:[%s2813_s6 + $0x28] sm:$0xff]  ;;  %v2352_v10 = vld [vmem:[#allocation7 + $0x38] sm:$0xff]  ;;  %v2351_v11 = vld [vmem:[#allocation7 + $0x30] sm:$0xff] }
  0x31   :  { %692 = vmatpush.bf16.msra.mxu3 %v2288_v27 }
  0x32   :  { %654 = vmatpush.bf16.msra.mxu0 %v2263_v28  ;;  %v2327_v28 = vld [vmem:[#allocation5] sm:$0xff] }
  0x33   :  { %667 = vmatpush.bf16.msra.mxu1 %v2271_v29 }
  0x34   :  { %680 = vmatpush.bf16.msra.mxu2 %v2279_v30  ;;  %v2428_v30 = vld [vmem:[%s2810_s3] ss:$0 sm:$0xff] }
  0x35   :  { %693 = vmatpush.bf16.msra.mxu3 %v2287_v31  ;;  %655 = vmatmul.bf16.vlgmr.msra.gmra.mxu0 %v123_v41  ;;  %v2342_v31 = vld [vmem:[%s2813_s6 + $0x38] sm:$0xff] }
  0x36   :  { %699 = vmatpush.bf16.msrb.mxu0 %v2302_v32  ;;  %668 = vmatmul.bf16.vlgmr.msra.gmra.mxu1 %v124_v43 }
  0x37   :  { %712 = vmatpush.bf16.msrb.mxu1 %v2310_v35  ;;  %681 = vmatmul.bf16.vlgmr.msra.gmra.mxu2 %v125_v40  ;;  %v2338_v40 = vld [vmem:[%s2813_s6 + $0x18] sm:$0xff] }
  0x38   :  { %725 = vmatpush.bf16.msrb.mxu2 %v2318_v38  ;;  %694 = vmatmul.bf16.vlgmr.msra.gmra.mxu3 %v126_v42  ;;  %v2339_v38 = vld [vmem:[%s2813_s6 + $0x20] sm:$0xff] }
  0x39   :  { %738 = vmatpush.bf16.msrb.mxu3 %v2326_v39 }
  0x3a   :  { %700 = vmatpush.bf16.msrb.mxu0 %v2301_v44 }
  0x3b   :  { %713 = vmatpush.bf16.msrb.mxu1 %v2309_v45  ;;  %v2337_v45 = vld [vmem:[%s2813_s6 + $0x10] sm:$0xff] }
  0x3c   :  { %726 = vmatpush.bf16.msrb.mxu2 %v2317_v46 }
  0x3d   :  { %739 = vmatpush.bf16.msrb.mxu3 %v2325_v47 }
  0x3e   :  { %701 = vmatpush.bf16.msrb.mxu0 %v2300_v48 }
  0x3f   :  { %714 = vmatpush.bf16.msrb.mxu1 %v2308_v49 }
  0x40   :  { %727 = vmatpush.bf16.msrb.mxu2 %v2316_v50 }
  0x41   :  { %740 = vmatpush.bf16.msrb.mxu3 %v2324_v51 }
  0x42   :  { %702 = vmatpush.bf16.msrb.mxu0 %v2299_v52 }
  0x43   :  { %715 = vmatpush.bf16.msrb.mxu1 %v2307_v53 }
  0x44   :  { %728 = vmatpush.bf16.msrb.mxu2 %v2315_v54 }
  0x45   :  { %741 = vmatpush.bf16.msrb.mxu3 %v2323_v55 }
  0x46   :  { %703 = vmatpush.bf16.msrb.mxu0 %v2298_v56 }
  0x47   :  { %716 = vmatpush.bf16.msrb.mxu1 %v2306_v57  ;;  %v2336_v57 = vld [vmem:[%s2813_s6 + $0x8] sm:$0xff] }
  0x48   :  { %729 = vmatpush.bf16.msrb.mxu2 %v2314_v58  ;;  %v2335_v58 = vld [vmem:[%s2813_s6] sm:$0xff] }
  0x49   :  { %742 = vmatpush.bf16.msrb.mxu3 %v2322_v59  ;;  %v2429_v59 = vld [vmem:[%s2812_s5] ss:$0 sm:$0xff]  ;;  %s2629_s5 = smov 96  }
  0x4a   :  { %704 = vmatpush.bf16.msrb.mxu0 %v2297_v60 }
  0x4b   :  { %717 = vmatpush.bf16.msrb.mxu1 %v2305_v61 }
  0x4c   :  { %730 = vmatpush.bf16.msrb.mxu2 %v2313_v62 }
  0x4d   :  { %743 = vmatpush.bf16.msrb.mxu3 %v2321_v63 }
  0x4e   :  { %705 = vmatpush.bf16.msrb.mxu0 %v2296_v0 }
  0x4f   :  { %718 = vmatpush.bf16.msrb.mxu1 %v2304_v1  ;;  %v2344_v1 = vld [vmem:[%s2815_s8 + $0x8] sm:$0xff] }
  0x50   :  { %731 = vmatpush.bf16.msrb.mxu2 %v2312_v2  ;;  %v2343_v2 = vld [vmem:[%s2815_s8] sm:$0xff] }
  0x51   :  { %744 = vmatpush.bf16.msrb.mxu3 %v2320_v3  ;;  %v2430_v3 = vld [vmem:[%s2814_s7] ss:$0 sm:$0xff] }
  0x52   :  { %706 = vmatpush.bf16.msrb.mxu0 %v2295_v4 }
  0x53   :  { %719 = vmatpush.bf16.msrb.mxu1 %v2303_v5 }
  0x54   :  { %732 = vmatpush.bf16.msrb.mxu2 %v2311_v6 }
  0x55   :  { %745 = vmatpush.bf16.msrb.mxu3 %v2319_v9  ;;  %707 = vmatmul.bf16.vlgmr.msrb.gmra.mxu0 %v127_v12  ;;  %v2350_v12 = vld [vmem:[#allocation7 + $0x28] sm:$0xff] }
  0x56   :  { %720 = vmatmul.bf16.vlgmr.msrb.gmra.mxu1 %v128_v13  ;;  %821 = vmatpush.bf16.msra.mxu0 %v2334_v16  ;;  %v2349_v13 = vld [vmem:[#allocation7 + $0x20] sm:$0xff] }
  0x57   :  { %733 = vmatmul.bf16.vlgmr.msrb.gmra.mxu2 %v129_v14  ;;  %904 = vmatpush.bf16.msra.mxu1 %v2342_v31  ;;  %v2348_v14 = vld [vmem:[#allocation7 + $0x18] sm:$0xff]  ;;  %v920_v16 = vld [vmem:[%s2808_s1] sm:$0xff]  ;;  %v2414_v31 = vld [vmem:[#allocation8 + $0x1e4] sm:$0xf0] }
  0x58   :  { %746 = vmatmul.bf16.vlgmr.msrb.gmra.mxu3 %v130_v15  ;;  %958 = vmatpush.bf16.msra.mxu2 %v2344_v1  ;;  %v2347_v15 = vld [vmem:[#allocation7 + $0x10] sm:$0xff]  ;;  %v2145_v1 = vld [vmem:[#allocation8 + $0x108] sm:$0xf] }
  0x59   :  { %1035 = vmatpush.bf16.msra.mxu3 %v2352_v10  ;;  %v2377_v10 = vld [vmem:[#allocation8 + $0xc4] sm:$0xf] }
  0x5a   :  { %822 = vmatpush.bf16.msra.mxu0 %v2333_v17 }
  0x5b   :  { %905 = vmatpush.bf16.msra.mxu1 %v2341_v34  ;;  %v2410_v34 = vld [vmem:[#allocation8 + $0x1cc] sm:$0xf] }
  0x5c   :  { %959 = vmatpush.bf16.msra.mxu2 %v2343_v2  ;;  %v2390_v2 = vld [vmem:[#allocation8 + $0x124] sm:$0xf0] }
  0x5d   :  { %1036 = vmatpush.bf16.msra.mxu3 %v2351_v11 }
  0x5e   :  { %823 = vmatpush.bf16.msra.mxu0 %v2332_v18 }
  0x5f   :  { %906 = vmatpush.bf16.msra.mxu1 %v2340_v36  ;;  %v2201_v36 = vld [vmem:[#allocation8 + $0x180] sm:$0xf] }
  0x61   :  { %1037 = vmatpush.bf16.msra.mxu3 %v2350_v12  ;;  %v2107_v12 = vld [vmem:[#allocation8 + $0xe0] sm:$0xf0] }
  0x62   :  { %824 = vmatpush.bf16.msra.mxu0 %v2331_v19 }
  0x63   :  { %907 = vmatpush.bf16.msra.mxu1 %v2339_v38  ;;  %v2405_v38 = vld [vmem:[#allocation8 + $0x19c] sm:$0xf0] }
  0x65   :  { %1038 = vmatpush.bf16.msra.mxu3 %v2349_v13  ;;  %v2113_v13 = vld [vmem:[#allocation8 + $0xc8] sm:$0xf] }
  0x66   :  { %825 = vmatpush.bf16.msra.mxu0 %v2330_v20 }
  0x67   :  { %908 = vmatpush.bf16.msra.mxu1 %v2338_v40  ;;  %v2203_v40 = vld [vmem:[#allocation8 + $0x1a0] sm:$0xf0] }
  0x69   :  { %1039 = vmatpush.bf16.msra.mxu3 %v2348_v14  ;;  %v2382_v14 = vld [vmem:[#allocation8 + $0xe4] sm:$0xf0] }
  0x6a   :  { %826 = vmatpush.bf16.msra.mxu0 %v2329_v22 }
  0x6b   :  { %909 = vmatpush.bf16.msra.mxu1 %v2337_v45  ;;  %v2402_v45 = vld [vmem:[#allocation8 + $0x18c] sm:$0xf] }
  0x6d   :  { %1040 = vmatpush.bf16.msra.mxu3 %v2347_v15  ;;  %v2378_v15 = vld [vmem:[#allocation8 + $0xcc] sm:$0xf] }
  0x6e   :  { %827 = vmatpush.bf16.msra.mxu0 %v2328_v24  ;;  %v2345_v24 = vld [vmem:[#allocation7] sm:$0xff] }
  0x6f   :  { %910 = vmatpush.bf16.msra.mxu1 %v2336_v57  ;;  %v2179_v57 = vld [vmem:[#allocation8 + $0x168] sm:$0xf0] }
  0x72   :  { %828 = vmatpush.bf16.msra.mxu0 %v2327_v28 }
  0x73   :  { %911 = vmatpush.bf16.msra.mxu1 %v2335_v58 }
  0xb2   :  { %v656_v21 = vpop.f32.mrf.mxu0 }
  0xb3   :  { %v669_v23 = vpop.f32.mrf.mxu1  ;;  %v657_v35 = vadd.f32 %v2428_v30, %v656_v21  ;;  %v2241_v30 = vld [vmem:[#allocation8 + $0x1c8] sm:$0xf] }
  0xb5   :  { %v670_v37 = vadd.f32 %v669_v23, %v657_v35  ;;  %v2346_v23 = vld [vmem:[#allocation7 + $0x8] sm:$0xff] }
  0xb6   :  { %1041 = vmatpush.bf16.msra.mxu3 %v2346_v23  ;;  %v2243_v35 = vld [vmem:[#allocation8 + $0x1e8] sm:$0xf0] }
  0xba   :  { %v682_v25 = vpop.f32.mrf.mxu2  ;;  %v658_v27 = vpop.f32.mrf.mxu0  ;;  %1042 = vmatpush.bf16.msra.mxu3 %v2345_v24  ;;  %v2075_v24 = vld [vmem:[#allocation8 + $0xa0] sm:$0xf0] }
  0xbb   :  { %v695_v26 = vpop.f32.mrf.mxu3  ;;  %v671_v29 = vpop.f32.mrf.mxu1  ;;  %v683_v39 = vadd.f32 %v682_v25, %v670_v37  ;;  %v2233_v25 = vld [vmem:[#allocation8 + $0x1c0] sm:$0xf]  ;;  %v2409_v27 = vld [vmem:[#allocation8 + $0x1c4] sm:$0xf]  ;;  %v2246_v37 = vor.u32 %v2410_v34, %v2243_v35 }
  0xbc   :  { %v2235_v29 = vld [vmem:[#allocation8 + $0x1e0] sm:$0xf0]  ;;  %v2365_v34 = vld [vmem:[#allocation8 + $0x5c] sm:$0xf0] }
  0xbd   :  { %v696_v41 = vadd.f32 %v695_v26, %v683_v39  ;;  %v2413_v26 = vld [vmem:[#allocation8 + $0x1dc] sm:$0xf0]  ;;  %v2401_v39 = vld [vmem:[#allocation8 + $0x184] sm:$0xf] }
  0xbe   :  { %v2234_v28 = vor.u32 %v2413_v26, %v2233_v25  ;;  %1491 = vmatpush.bf16.msrb.mxu3 %v2246_v37  ;;  %v2081_v25 = vld [vmem:[#allocation8 + $0x88] sm:$0xf]  ;;  %v2361_v35 = vld [vmem:[#allocation8 + $0x44] sm:$0xf] }
  0xbf   :  { %v2374_v26 = vld [vmem:[#allocation8 + $0xa4] sm:$0xf0]  ;;  %v2043_v37 = vld [vmem:[#allocation8 + $0x60] sm:$0xf0] }
  0xc0   :  { %1452 = vmatpush.bf16.msrb.mxu2 %v2234_v28  ;;  %v2083_v28 = vld [vmem:[#allocation8 + $0xa8] sm:$0xf0] }
  0xc2   :  { %v684_v32 = vpop.f32.mrf.mxu2 }
  0xc3   :  { %v697_v33 = vpop.f32.mrf.mxu3  ;;  %v2238_v32 = vor.u32 %v2409_v27, %v2235_v29  ;;  %v2370_v27 = vld [vmem:[#allocation8 + $0x8c] sm:$0xf]  ;;  %v2431_v29 = vld [vmem:[%s2816_s9] ss:$0 sm:$0xff] }
  0xc4   :  { %v2242_v33 = vor.u32 %v2414_v31, %v2241_v30 }
  0xc5   :  { %1465 = vmatpush.bf16.msrb.mxu0 %v2238_v32  ;;  %v2082_v32 = vor.u32 %v2374_v26, %v2081_v25  ;;  %v2395_v25 = vld [vmem:[#allocation8 + $0x154] sm:$0xf] }
  0xc6   :  { %1478 = vmatpush.bf16.msrb.mxu1 %v2242_v33  ;;  %v2041_v33 = vld [vmem:[#allocation8 + $0x40] sm:$0xf] }
  0xd2   :  { %v708_v42 = vpop.f32.mrf.mxu0 }
  0xd3   :  { %v721_v43 = vpop.f32.mrf.mxu1  ;;  %v709_v44 = vadd.f32 %v708_v42, %v696_v41  ;;  %v2202_v41 = vor.u32 %v2405_v38, %v2201_v36  ;;  %v2206_v42 = vor.u32 %v2401_v39, %v2203_v40  ;;  %v2086_v36 = vor.u32 %v2370_v27, %v2083_v28  ;;  %v2049_v38 = vld [vmem:[#allocation8 + $0x48] sm:$0xf]  ;;  %v2362_v40 = vld [vmem:[#allocation8 + $0x4c] sm:$0xf]  ;;  %v2187_v27 = vld [vmem:[#allocation8 + $0x170] sm:$0xf0] }
  0xd4   :  { %v2366_v39 = vld [vmem:[#allocation8 + $0x64] sm:$0xf0]  ;;  %v2193_v28 = vld [vmem:[#allocation8 + $0x158] sm:$0xf] }
  0xd5   :  { %v722_v46 = vadd.f32 %v721_v43, %v709_v44  ;;  %v2209_v43 = vld [vmem:[#allocation8 + $0x188] sm:$0xf]  ;;  %1453 = vmatpush.bf16.msrb.mxu2 %v2202_v41  ;;  %1466 = vmatpush.bf16.msrb.mxu0 %v2206_v42  ;;  %v2051_v41 = vld [vmem:[#allocation8 + $0x68] sm:$0xf0]  ;;  %v2042_v42 = vor.u32 %v2365_v34, %v2041_v33  ;;  %v2195_v33 = vld [vmem:[#allocation8 + $0x178] sm:$0xf0] }
  0xd6   :  { %v2406_v44 = vld [vmem:[#allocation8 + $0x1a4] sm:$0xf0] }
  0xda   :  { %v734_v47 = vpop.f32.mrf.mxu2  ;;  %v710_v50 = vpop.f32.mrf.mxu0 }
  0xdb   :  { %v747_v48 = vpop.f32.mrf.mxu3  ;;  %v735_v49 = vadd.f32 %v734_v47, %v722_v46  ;;  %v723_v51 = vpop.f32.mrf.mxu1  ;;  %v2210_v46 = vor.u32 %v2406_v44, %v2209_v43  ;;  %v2211_v47 = vld [vmem:[#allocation8 + $0x1a8] sm:$0xf0]  ;;  %v2009_v43 = vld [vmem:[#allocation8] sm:$0xf] }
  0xdc   :  { %v2214_v50 = vor.u32 %v2402_v45, %v2211_v47  ;;  %v2393_v51 = vld [vmem:[#allocation8 + $0x144] sm:$0xf]  ;;  %v2357_v44 = vld [vmem:[#allocation8 + $0x1c] sm:$0xf0]  ;;  %v2046_v47 = vor.u32 %v2361_v35, %v2043_v37  ;;  %v2153_v35 = vld [vmem:[#allocation8 + $0x110] sm:$0xf] }
  0xdd   :  { %v748_v52 = vadd.f32 %v747_v48, %v735_v49  ;;  %v2169_v48 = vld [vmem:[#allocation8 + $0x140] sm:$0xf]  ;;  %1479 = vmatpush.bf16.msrb.mxu1 %v2210_v46  ;;  %v2353_v45 = vld [vmem:[#allocation8 + $0x4] sm:$0xf]  ;;  %v2387_v37 = vld [vmem:[#allocation8 + $0x114] sm:$0xf] }
  0xde   :  { %v2397_v49 = vld [vmem:[#allocation8 + $0x15c] sm:$0xf0]  ;;  %1492 = vmatpush.bf16.msrb.mxu3 %v2214_v50  ;;  %v2017_v50 = vld [vmem:[#allocation8 + $0x8] sm:$0xf] }
  0xdf   :  { %v751_v53 = vmax.f32 %v748_v52, 0.0  ;;  %v2171_v52 = vld [vmem:[#allocation8 + $0x160] sm:$0xf0] }
  0xe0   :  { %v2174_v58 = vor.u32 %v2393_v51, %v2171_v52  ;;  %v2358_v51 = vld [vmem:[#allocation8 + $0x24] sm:$0xf0] }
  0xe1   :  { %v752_v54 = vpack.c.bf16 %v751_v53, %v751_v53  ;;  %v2177_v53 = vld [vmem:[#allocation8 + $0x148] sm:$0xf] }
  0xe2   :  { %v736_v55 = vpop.f32.mrf.mxu2  ;;  %1467 = vmatpush.bf16.msrb.mxu0 %v2174_v58  ;;  %v2411_v58 = vld [vmem:[#allocation8 + $0x1d4] sm:$0xf] }
  0xe3   :  { %v749_v56 = vpop.f32.mrf.mxu3  ;;  %829 = vmatmul.bf16.vlgmr.msra.gmra.mxu0 %v752_v54  ;;  %v2170_v54 = vor.u32 %v2397_v49, %v2169_v48  ;;  %v2398_v55 = vld [vmem:[#allocation8 + $0x164] sm:$0xf0]  ;;  %v2050_v48 = vor.u32 %v2366_v39, %v2049_v38  ;;  %v2011_v49 = vld [vmem:[#allocation8 + $0x20] sm:$0xf0]  ;;  %v2155_v39 = vld [vmem:[#allocation8 + $0x130] sm:$0xf0] }
  0xe4   :  { %v2394_v56 = vld [vmem:[#allocation8 + $0x14c] sm:$0xf] }
  0xe5   :  { %1454 = vmatpush.bf16.msrb.mxu2 %v2170_v54  ;;  %v2354_v54 = vld [vmem:[#allocation8 + $0xc] sm:$0xf] }
 0x160   :  { %v830_v60 = vpop.f32.mrf.mxu0 }
 0x161   :  { %v831_v61 = vadd.f32 %v2429_v59, %v830_v60  ;;  %v2178_v59 = vor.u32 %v2398_v55, %v2177_v53  ;;  %v2137_v60 = vld [vmem:[#allocation8 + $0x100] sm:$0xf]  ;;  %v2054_v53 = vor.u32 %v2362_v40, %v2051_v41  ;;  %v2019_v55 = vld [vmem:[#allocation8 + $0x28] sm:$0xf0]  ;;  %v2161_v40 = vld [vmem:[#allocation8 + $0x118] sm:$0xf] }
 0x162   :  { %v2392_v41 = vld [vmem:[#allocation8 + $0x134] sm:$0xf0] }
 0x163   :  { %v834_v62 = vmax.f32 %v831_v61, 0.0  ;;  %v2389_v61 = vld [vmem:[#allocation8 + $0x11c] sm:$0xf0]  ;;  %1480 = vmatpush.bf16.msrb.mxu1 %v2178_v59  ;;  %v2251_v59 = vld [vmem:[#allocation8 + $0x1f0] sm:$0xf0] }
 0x165   :  { %v835_v63 = vpack.c.bf16 %v834_v62, %v834_v62  ;;  %v2385_v62 = vld [vmem:[#allocation8 + $0x104] sm:$0xf] }
 0x167   :  { %912 = vmatmul.bf16.vlgmr.msra.gmra.mxu1 %v835_v63  ;;  %v2182_v63 = vor.u32 %v2394_v56, %v2179_v57  ;;  %v2249_v56 = vld [vmem:[#allocation8 + $0x1d0] sm:$0xf] }
 0x168   :  { %v832_v0 = vpop.f32.mrf.mxu0  ;;  %v2415_v57 = vld [vmem:[#allocation8 + $0x1ec] sm:$0xf0] }
 0x169   :  { %v2139_v0 = vld [vmem:[#allocation8 + $0x120] sm:$0xf0]  ;;  %1493 = vmatpush.bf16.msrb.mxu3 %v2182_v63  ;;  %v2416_v63 = vld [vmem:[#allocation8 + $0x1f4] sm:$0xf0] }
 0x1e4   :  { %v913_v4 = vpop.f32.mrf.mxu1 }
 0x1e5   :  { %v914_v5 = vadd.f32 %v2430_v3, %v913_v4  ;;  %v2386_v3 = vld [vmem:[#allocation8 + $0x10c] sm:$0xf] }
 0x1e6   :  { %v2147_v4 = vld [vmem:[#allocation8 + $0x128] sm:$0xf0] }
 0x1e7   :  { %v917_v6 = vmul.f32 0.5, %v914_v5  ;;  %v2150_v11 = vor.u32 %v2386_v3, %v2147_v4  ;;  %v2259_v3 = vld [vmem:[#allocation8 + $0x1f8] sm:$0xf0] }
 0x1e9   :  { %v918_v7 = vmul.f32 1.442695, %v917_v6  ;;  %v2142_v6 = vor.u32 %v2385_v62, %v2139_v0  ;;  %1494 = vmatpush.bf16.msrb.mxu3 %v2150_v11  ;;  %v2257_v62 = vld [vmem:[#allocation8 + $0x1d8] sm:$0xf]  ;;  %v2014_v0 = vor.u32 %v2353_v45, %v2011_v49  ;;  %v2403_v11 = vld [vmem:[#allocation8 + $0x194] sm:$0xf] }
 0x1ea   :  { %v2163_v45 = vld [vmem:[#allocation8 + $0x138] sm:$0xf0]  ;;  %v2379_v49 = vld [vmem:[#allocation8 + $0xd4] sm:$0xf] }
 0x1eb   :  { %2433 = vpow2.f32 %v918_v7  ;;  %v2146_v7 = vor.u32 %v2390_v2, %v2145_v1  ;;  %1468 = vmatpush.bf16.msrb.mxu0 %v2142_v6  ;;  %v2018_v1 = vor.u32 %v2358_v51, %v2017_v50  ;;  %v2412_v2 = vld [vmem:[#allocation8 + $0x1dc] sm:$0xf]  ;;  %v2250_v6 = vor.u32 %v2415_v57, %v2249_v56  ;;  %v2123_v51 = vld [vmem:[#allocation8 + $0xf0] sm:$0xf0] }
 0x1ec   :  { %v915_v8 = vpop.f32.mrf.mxu1  ;;  %v2380_v56 = vld [vmem:[#allocation8 + $0xdc] sm:$0xf] }
 0x1ed   :  { %v2105_v8 = vld [vmem:[#allocation8 + $0xc0] sm:$0xf]  ;;  %1481 = vmatpush.bf16.msrb.mxu1 %v2146_v7  ;;  %v2254_v7 = vor.u32 %v2411_v58, %v2251_v59  ;;  %v2131_v57 = vld [vmem:[#allocation8 + $0xf8] sm:$0xf0]  ;;  %v2089_v58 = vld [vmem:[#allocation8 + $0x90] sm:$0xf] }
 0x1ee   :  { %v2134_v59 = vor.u32 %v2380_v56, %v2131_v57 }
 0x1f1   :  { %v2434_v9 = vpop.eup %2433 }
 0x1f2   :  { %922 = vrot.lane.b32.xlu0 %v2434_v9, %s2629_s5  ;;  %v2381_v9 = vld [vmem:[#allocation8 + $0xdc] sm:$0xf0] }
 0x1fa   :  { %1597 = vrot.lane.b32.xlu0 %v914_v5, %s2628_s24 }
 0x264   :  { %v923_v17 = vpop.permute.xlu0 %922 }
 0x265   :  { %v925_v18 = vmul.f32 %v923_v17, %v920_v16  ;;  %v2115_v16 = vld [vmem:[#allocation8 + $0xe8] sm:$0xf0]  ;;  %v2106_v17 = vor.u32 %v2381_v9, %v2105_v8  ;;  %v2258_v8 = vor.u32 %v2416_v63, %v2257_v62  ;;  %v2217_v9 = vld [vmem:[#allocation8 + $0x190] sm:$0xf]  ;;  %v2091_v62 = vld [vmem:[#allocation8 + $0xb0] sm:$0xf0] }
 0x266   :  { %v2118_v23 = vor.u32 %v2378_v15, %v2115_v16  ;;  %v2408_v15 = vld [vmem:[#allocation8 + $0x1b4] sm:$0xf0] }
 0x267   :  { %v926_v19 = vadd.f32 %v925_v18, %v914_v5  ;;  %v2138_v5 = vor.u32 %v2389_v61, %v2137_v60  ;;  %v2110_v18 = vor.u32 %v2377_v10, %v2107_v12  ;;  %v2010_v61 = vor.u32 %v2357_v44, %v2009_v43  ;;  %v2407_v10 = vld [vmem:[#allocation8 + $0x1ac] sm:$0xf0]  ;;  %v2388_v44 = vld [vmem:[#allocation8 + $0x11c] sm:$0xf] }
 0x268   :  { %1495 = vmatpush.bf16.msrb.mxu3 %v2118_v23  ;;  %v2262_v12 = vor.u32 %v2412_v2, %v2259_v3  ;;  %v2185_v23 = vld [vmem:[#allocation8 + $0x150] sm:$0xf]  ;;  %v2162_v43 = vor.u32 %v2392_v41, %v2161_v40  ;;  %v2376_v2 = vld [vmem:[#allocation8 + $0xb4] sm:$0xf0]  ;;  %v2372_v3 = vld [vmem:[#allocation8 + $0x9c] sm:$0xf] }
 0x269   :  { %v927_v20 = vpack.c.bf16 %v926_v19, %v926_v19  ;;  %1455 = vmatpush.bf16.msrb.mxu2 %v2138_v5  ;;  %1469 = vmatpush.bf16.msrb.mxu0 %v2110_v18  ;;  %v2022_v5 = vor.u32 %v2354_v54, %v2019_v55  ;;  %v2227_v18 = vld [vmem:[#allocation8 + $0x1b8] sm:$0xf0]  ;;  %v2126_v54 = vor.u32 %v2379_v49, %v2123_v51 }
 0x26b   :  { %1974 = vmatmul.msk.bf16.vlgmr.msra.gmra.mxu2 %vm948_vm0, %v927_v20  ;;  %v2073_v20 = vld [vmem:[#allocation8 + $0x80] sm:$0xf] }
 0x26c   :  { %v1598_v21 = vpop.permute.xlu0 %1597  ;;  %1496 = vmatpush.bf16.msrb.mxu3 %v2086_v36  ;;  %v2391_v36 = vld [vmem:[#allocation8 + $0x12c] sm:$0xf0] }
 0x26d   :  { %v1600_v22 = vsel %vm948_vm0, %v926_v19, %v1598_v21  ;;  %v2114_v19 = vor.u32 %v2382_v14, %v2113_v13  ;;  %v2373_v21 = vld [vmem:[#allocation8 + $0x9c] sm:$0xf0]  ;;  %1456 = vmatpush.bf16.msrb.mxu2 %v2106_v17  ;;  %v2219_v13 = vld [vmem:[#allocation8 + $0x1b0] sm:$0xf0]  ;;  %v2225_v14 = vld [vmem:[#allocation8 + $0x198] sm:$0xf]  ;;  %v2154_v38 = vor.u32 %v2391_v36, %v2153_v35 }
 0x26e   :  { %1602 = vst.msk [vmem:[#allocation10] sm:$0xff] %vm1601_vm1, %v1600_v22  ;;  %v2369_v22 = vld [vmem:[#allocation8 + $0x84] sm:$0xf]  ;;  %v2074_v30 = vor.u32 %v2373_v21, %v2073_v20  ;;  %v2404_v17 = vld [vmem:[#allocation8 + $0x19c] sm:$0xf]  ;;  %v2222_v20 = vor.u32 %v2403_v11, %v2219_v13  ;;  %v2226_v21 = vor.u32 %v2408_v15, %v2225_v14 }
 0x26f   :  { %1482 = vmatpush.bf16.msrb.mxu1 %v2114_v19  ;;  %v2078_v31 = vor.u32 %v2369_v22, %v2075_v24  ;;  %v2218_v19 = vor.u32 %v2407_v10, %v2217_v9  ;;  %v2230_v22 = vor.u32 %v2404_v17, %v2227_v18  ;;  %v2399_v24 = vld [vmem:[#allocation8 + $0x16c] sm:$0xf0]  ;;  %v2363_v9 = vld [vmem:[#allocation8 + $0x54] sm:$0xf]  ;;  %v2065_v11 = vld [vmem:[#allocation8 + $0x58] sm:$0xf] }
 0x270   :  { %1497 = vmatpush.bf16.msrb.mxu3 %v2054_v53  ;;  %v2186_v26 = vor.u32 %v2399_v24, %v2185_v23  ;;  %v2384_v53 = vld [vmem:[#allocation8 + $0xf4] sm:$0xf0]  ;;  %v2059_v10 = vld [vmem:[#allocation8 + $0x70] sm:$0xf0]  ;;  %v2364_v14 = vld [vmem:[#allocation8 + $0x5c] sm:$0xf] }
 0x271   :  { %1457 = vmatpush.bf16.msrb.mxu2 %v2074_v30  ;;  %1470 = vmatpush.bf16.msrb.mxu0 %v2078_v31  ;;  %v2190_v30 = vor.u32 %v2395_v25, %v2187_v27  ;;  %v2368_v13 = vld [vmem:[#allocation8 + $0x74] sm:$0xf0]  ;;  %v2067_v15 = vld [vmem:[#allocation8 + $0x78] sm:$0xf0]  ;;  %v2025_v18 = vld [vmem:[#allocation8 + $0x10] sm:$0xf] }
 0x272   :  { %v2066_v17 = vor.u32 %v2368_v13, %v2065_v11  ;;  %v2033_v23 = vld [vmem:[#allocation8 + $0x18] sm:$0xf]  ;;  %v2356_v25 = vld [vmem:[#allocation8 + $0x1c] sm:$0xf]  ;;  %1621 = dma.vmem_to_hbm [thread:$0]  %s1617_s27, 128, %s1619_s29, [#allocation4]  }
 0x273   :  { %1483 = vmatpush.bf16.msrb.mxu1 %v2082_v32  ;;  %v2396_v32 = vld [vmem:[#allocation8 + $0x15c] sm:$0xf]  ;;  %v2360_v24 = vld [vmem:[#allocation8 + $0x34] sm:$0xf0] }
 0x274   :  { %1498 = vmatpush.bf16.msrb.mxu3 %v2022_v5  ;;  %v2198_v34 = vor.u32 %v2396_v32, %v2195_v33  ;;  %v2099_v5 = vld [vmem:[#allocation8 + $0xb8] sm:$0xf0] }
 0x275   :  { %1458 = vmatpush.bf16.msrb.mxu2 %v2042_v42  ;;  %1471 = vmatpush.bf16.msrb.mxu0 %v2046_v47  ;;  %v2158_v42 = vor.u32 %v2387_v37, %v2155_v39  ;;  %v2121_v47 = vld [vmem:[#allocation8 + $0xd0] sm:$0xf]  ;;  %v1114_v37 = vld [vmem:[%s2820_s13] sm:$0xff]  ;;  %s2631_s13 = smov [#allocation11]  }
 0x276   :  { %v1118_v39 = vperm.slane %v1114_v37, 2  ;;  %s1627_s14 = sshll.u32 %s2631_s13, 4  ;;  %s1628_s14 = int_to_ptr.vmem [resolvable:$true] %s1627_s14 }
 0x277   :  { %1484 = vmatpush.bf16.msrb.mxu1 %v2050_v48  ;;  %v2383_v48 = vld [vmem:[#allocation8 + $0xec] sm:$0xf0] }
 0x278   :  { %v2122_v50 = vor.u32 %v2383_v48, %v2121_v47  ;;  %v1119_v47 = vperm.slane %v1114_v37, 3 }
 0x279   :  { %1459 = vmatpush.bf16.msrb.mxu2 %v2010_v61  ;;  %1472 = vmatpush.bf16.msrb.mxu0 %v2014_v0  ;;  %v2371_v61 = vld [vmem:[#allocation8 + $0x94] sm:$0xf] }
 0x27a   :  { %v2094_v0 = vor.u32 %v2371_v61, %v2091_v62  ;;  %v1121_v61 = vperm.slane %v1114_v37, 5 }
 0x27b   :  { %1485 = vmatpush.bf16.msrb.mxu1 %v2018_v1  ;;  %v2097_v1 = vld [vmem:[#allocation8 + $0x98] sm:$0xf] }
 0x27d   :  { %1504 = vmatpush.bf16.msra.mxu2 %v2250_v6  ;;  %1517 = vmatpush.bf16.msra.mxu0 %v2254_v7  ;;  %v2057_v6 = vld [vmem:[#allocation8 + $0x50] sm:$0xf] }
 0x27e   :  { %v2367_v7 = vld [vmem:[#allocation8 + $0x6c] sm:$0xf0] }
 0x27f   :  { %1530 = vmatpush.bf16.msra.mxu1 %v2258_v8  ;;  %v2102_v8 = vor.u32 %v2372_v3, %v2099_v5 }
 0x281   :  { %1505 = vmatpush.bf16.msra.mxu2 %v2218_v19  ;;  %1518 = vmatpush.bf16.msra.mxu0 %v2222_v20  ;;  %v2359_v19 = vld [vmem:[#allocation8 + $0x2c] sm:$0xf0]  ;;  %v2355_v20 = vld [vmem:[#allocation8 + $0x14] sm:$0xf] }
 0x282   :  { %v2026_v27 = vor.u32 %v2359_v19, %v2025_v18 }
 0x283   :  { %1531 = vmatpush.bf16.msra.mxu1 %v2226_v21  ;;  %v2070_v21 = vor.u32 %v2364_v14, %v2067_v15  ;;  %v1123_v14 = vperm.slane %v1114_v37, 7 }
 0x285   :  { %1506 = vmatpush.bf16.msra.mxu2 %v2186_v26  ;;  %1519 = vmatpush.bf16.msra.mxu0 %v2190_v30  ;;  %v2035_v26 = vld [vmem:[#allocation8 + $0x38] sm:$0xf0] }
 0x286   :  { %v2038_v30 = vor.u32 %v2356_v25, %v2035_v26 }
 0x289   :  { %1507 = vmatpush.bf16.msra.mxu2 %v2154_v38  ;;  %1520 = vmatpush.bf16.msra.mxu0 %v2158_v42  ;;  %v1117_v38 = vperm.slane %v1114_v37, 1 }
 0x28d   :  { %1508 = vmatpush.bf16.msra.mxu2 %v2122_v50  ;;  %1521 = vmatpush.bf16.msra.mxu0 %v2126_v54 }
 0x291   :  { %1522 = vmatpush.bf16.msra.mxu0 %v2094_v0 }
 0x2ee   :  { %v961_v46 = vpop.f32.mrf.mxu2 }
 0x2ef   :  { %v962_v52 = vadd.f32 %v2431_v29, %v961_v46  ;;  %v2400_v29 = vld [vmem:[#allocation8 + $0x174] sm:$0xf0]  ;;  %v2166_v46 = vor.u32 %v2388_v44, %v2163_v45  ;;  %v1116_v45 = vperm.slane %v1114_v37, 0 }
 0x2f0   :  { %v2194_v31 = vor.u32 %v2400_v29, %v2193_v28  ;;  %v2034_v29 = vor.u32 %v2360_v24, %v2033_v23 }
 0x2f1   :  { %v965_v60 = vmax.f32 %v962_v52, 0.0  ;;  %v2129_v52 = vld [vmem:[#allocation8 + $0xd8] sm:$0xf] }
 0x2f2   :  { %1532 = vmatpush.bf16.msra.mxu1 %v2194_v31  ;;  %v2130_v55 = vor.u32 %v2384_v53, %v2129_v52  ;;  %v2432_v31 = vld [vmem:[%s2818_s11] ss:$0 sm:$0xff] }
 0x2f3   :  { %v966_v4 = vpack.c.bf16 %v965_v60, %v965_v60  ;;  %v2375_v60 = vld [vmem:[#allocation8 + $0xac] sm:$0xf0] }
 0x2f4   :  { %v2090_v63 = vor.u32 %v2375_v60, %v2089_v58 }
 0x2f5   :  { %1043 = vmatmul.bf16.vlgmr.msra.gmra.mxu3 %v966_v4  ;;  %v2098_v4 = vor.u32 %v2376_v2, %v2097_v1  ;;  %v1122_v1 = vperm.slane %v1114_v37, 6 }
 0x2f6   :  { %v963_v16 = vpop.f32.mrf.mxu2  ;;  %1543 = vmatpush.bf16.msra.mxu3 %v2262_v12  ;;  %1533 = vmatpush.bf16.msra.mxu1 %v2162_v43  ;;  %v2058_v12 = vor.u32 %v2367_v7, %v2057_v6 }
 0x2f7   :  { %1509 = vmatpush.bf16.msra.mxu2 %v2090_v63  ;;  %v2062_v16 = vor.u32 %v2363_v9, %v2059_v10  ;;  %v1120_v10 = vperm.slane %v1114_v37, 4 }
 0x2f9   :  { %1523 = vmatpush.bf16.msra.mxu0 %v2062_v16 }
 0x2fa   :  { %1544 = vmatpush.bf16.msra.mxu3 %v2230_v22  ;;  %1534 = vmatpush.bf16.msra.mxu1 %v2130_v55  ;;  %v2027_v22 = vld [vmem:[#allocation8 + $0x30] sm:$0xf0] }
 0x2fb   :  { %1510 = vmatpush.bf16.msra.mxu2 %v2058_v12  ;;  %v2030_v28 = vor.u32 %v2355_v20, %v2027_v22 }
 0x2fd   :  { %1524 = vmatpush.bf16.msra.mxu0 %v2030_v28 }
 0x2fe   :  { %1545 = vmatpush.bf16.msra.mxu3 %v2198_v34  ;;  %1535 = vmatpush.bf16.msra.mxu1 %v2098_v4 }
 0x2ff   :  { %1511 = vmatpush.bf16.msra.mxu2 %v2026_v27 }
 0x302   :  { %1546 = vmatpush.bf16.msra.mxu3 %v2166_v46  ;;  %1536 = vmatpush.bf16.msra.mxu1 %v2066_v17 }
 0x306   :  { %1547 = vmatpush.bf16.msra.mxu3 %v2134_v59  ;;  %1537 = vmatpush.bf16.msra.mxu1 %v2034_v29 }
 0x30a   :  { %1548 = vmatpush.bf16.msra.mxu3 %v2102_v8 }
 0x30e   :  { %1549 = vmatpush.bf16.msra.mxu3 %v2070_v21 }
 0x312   :  { %1550 = vmatpush.bf16.msra.mxu3 %v2038_v30 }
 0x378   :  { %v1044_v32 = vpop.f32.mrf.mxu3 }
 0x379   :  { %v1045_v33 = vadd.f32 %v2432_v31, %v1044_v32 }
 0x37b   :  { %v1048_v34 = vmax.f32 %v1045_v33, 0.0 }
 0x37d   :  { %v1049_v35 = vpack.c.bf16 %v1048_v34, %v1048_v34 }
 0x37f   :  { %1460 = vmatmul.bf16.vlgmr.msrb.gmra.mxu2 %v1049_v35  ;;  %1473 = vmatmul.bf16.vlgmr.msrb.gmra.mxu0 %v1049_v35 }
 0x380   :  { %1486 = vmatmul.bf16.vlgmr.msrb.gmra.mxu1 %v1049_v35  ;;  %1499 = vmatmul.bf16.vlgmr.msrb.gmra.mxu3 %v1049_v35  ;;  %v1046_v36 = vpop.f32.mrf.mxu3 }
 0x38f   :  { %1512 = vmatmul.bf16.vlgmr.msra.gmra.mxu2 %v1049_v35  ;;  %1525 = vmatmul.bf16.vlgmr.msra.gmra.mxu0 %v1049_v35 }
 0x390   :  { %1538 = vmatmul.bf16.vlgmr.msra.gmra.mxu1 %v1049_v35  ;;  %1551 = vmatmul.bf16.vlgmr.msra.gmra.mxu3 %v1049_v35 }
 0x3fc   :  { %v1474_v40 = vpop.f32.mrf.mxu0 }
 0x3fd   :  { %v1475_v41 = vadd.f32 %v1474_v40, %v1117_v38  ;;  %v1487_v42 = vpop.f32.mrf.mxu1 }
 0x3fe   :  { %v1488_v43 = vadd.f32 %v1487_v42, %v1118_v39 }
 0x3ff   :  { %v1557_v44 = vsub.f32 0.0, %v1475_v41 }
 0x400   :  { %v1558_v46 = vsub.f32 0.0, %v1488_v43 }
 0x401   :  { %v1566_v48 = vmul.f32 1.442695, %v1557_v44 }
 0x402   :  { %v1568_v49 = vmul.f32 1.442695, %v1558_v46  ;;  %v1461_v50 = vpop.f32.mrf.mxu2 }
 0x403   :  { %2435 = vpow2.f32 %v1566_v48  ;;  %v1462_v51 = vadd.f32 %v1461_v50, %v1116_v45  ;;  %v1500_v52 = vpop.f32.mrf.mxu3 }
 0x404   :  { %2437 = vpow2.f32 %v1568_v49  ;;  %v1501_v53 = vadd.f32 %v1500_v52, %v1119_v47  ;;  %v1476_v54 = vpop.f32.mrf.mxu0 }
 0x405   :  { %v1556_v55 = vsub.f32 0.0, %v1462_v51  ;;  %v1489_v56 = vpop.f32.mrf.mxu1 }
 0x406   :  { %v1559_v57 = vsub.f32 0.0, %v1501_v53 }
 0x407   :  { %v1564_v58 = vmul.f32 1.442695, %v1556_v55 }
 0x408   :  { %v1570_v59 = vmul.f32 1.442695, %v1559_v57 }
 0x409   :  { %v2436_v60 = vpop.eup %2435  ;;  %2439 = vpow2.f32 %v1564_v58 }
 0x40a   :  { %v2438_v62 = vpop.eup %2437  ;;  %v1581_v63 = vadd.f32 1.0, %v2436_v60  ;;  %2441 = vpow2.f32 %v1570_v59  ;;  %v1463_v0 = vpop.f32.mrf.mxu2 }
 0x40b   :  { %v1582_v2 = vadd.f32 1.0, %v2438_v62  ;;  %v1502_v3 = vpop.f32.mrf.mxu3 }
 0x40c   :  { %2443 = vrcp.f32 %v1581_v63  ;;  %v1526_v4 = vpop.f32.mrf.mxu0 }
 0x40d   :  { %2445 = vrcp.f32 %v1582_v2  ;;  %v1527_v5 = vadd.f32 %v1526_v4, %v1121_v61  ;;  %v1539_v6 = vpop.f32.mrf.mxu1 }
 0x40e   :  { %v1540_v7 = vadd.f32 %v1539_v6, %v1122_v1 }
 0x40f   :  { %v2440_v8 = vpop.eup %2439  ;;  %v1561_v9 = vsub.f32 0.0, %v1527_v5 }
 0x410   :  { %v2442_v11 = vpop.eup %2441  ;;  %v1580_v12 = vadd.f32 1.0, %v2440_v8  ;;  %v1562_v13 = vsub.f32 0.0, %v1540_v7 }
 0x411   :  { %v1583_v15 = vadd.f32 1.0, %v2442_v11  ;;  %v1574_v16 = vmul.f32 1.442695, %v1561_v9 }
 0x412   :  { %v2444_v17 = vpop.eup %2443  ;;  %2447 = vrcp.f32 %v1580_v12  ;;  %v1576_v18 = vmul.f32 1.442695, %v1562_v13  ;;  %v1513_v19 = vpop.f32.mrf.mxu2 }
 0x413   :  { %v2446_v20 = vpop.eup %2445  ;;  %1604 = vst [vmem:[#allocation11 + $0x8] sm:$0xff] %v2444_v17  ;;  %2449 = vrcp.f32 %v1583_v15  ;;  %v1514_v21 = vadd.f32 %v1513_v19, %v1120_v10  ;;  %v1552_v22 = vpop.f32.mrf.mxu3 }
 0x414   :  { %1605 = vst [vmem:[#allocation11 + $0x10] sm:$0xff] %v2446_v20  ;;  %2451 = vpow2.f32 %v1574_v16  ;;  %v1553_v23 = vadd.f32 %v1552_v22, %v1123_v14  ;;  %v1528_v24 = vpop.f32.mrf.mxu0 }
 0x415   :  { %2453 = vpow2.f32 %v1576_v18  ;;  %v1560_v25 = vsub.f32 0.0, %v1514_v21  ;;  %v1541_v26 = vpop.f32.mrf.mxu1 }
 0x416   :  { %v1563_v27 = vsub.f32 0.0, %v1553_v23 }
 0x417   :  { %v1572_v28 = vmul.f32 1.442695, %v1560_v25 }
 0x418   :  { %v2448_v29 = vpop.eup %2447  ;;  %v1578_v30 = vmul.f32 1.442695, %v1563_v27 }
 0x419   :  { %v2450_v31 = vpop.eup %2449  ;;  %1603 = vst [vmem:[#allocation11] sm:$0xff] %v2448_v29  ;;  %2455 = vpow2.f32 %v1572_v28 }
 0x41a   :  { %v2452_v32 = vpop.eup %2451  ;;  %1606 = vst [vmem:[#allocation11 + $0x18] sm:$0xff] %v2450_v31  ;;  %2457 = vpow2.f32 %v1578_v30  ;;  %v1515_v33 = vpop.f32.mrf.mxu2 }
 0x41b   :  { %v2454_v34 = vpop.eup %2453  ;;  %v1585_v35 = vadd.f32 1.0, %v2452_v32  ;;  %v1554_v36 = vpop.f32.mrf.mxu3 }
 0x41c   :  { %v1586_v37 = vadd.f32 1.0, %v2454_v34 }
 0x41d   :  { %2459 = vrcp.f32 %v1585_v35 }
 0x41e   :  { %2461 = vrcp.f32 %v1586_v37 }
 0x41f   :  { %v2456_v38 = vpop.eup %2455 }
 0x420   :  { %v2458_v39 = vpop.eup %2457  ;;  %v1584_v40 = vadd.f32 1.0, %v2456_v38 }
 0x421   :  { %v1587_v41 = vadd.f32 1.0, %v2458_v39 }
 0x422   :  { %2463 = vrcp.f32 %v1584_v40 }
 0x423   :  { %v2460_v42 = vpop.eup %2459  ;;  %2465 = vrcp.f32 %v1587_v41 }
 0x424   :  { %v2462_v43 = vpop.eup %2461  ;;  %1608 = vst [vmem:[#allocation11 + $0x28] sm:$0xff] %v2460_v42 }
 0x425   :  { %1609 = vst [vmem:[#allocation11 + $0x30] sm:$0xff] %v2462_v43 }
 0x428   :  { %v2464_v44 = vpop.eup %2463 }
 0x429   :  { %v2466_v45 = vpop.eup %2465  ;;  %1607 = vst [vmem:[#allocation11 + $0x20] sm:$0xff] %v2464_v44 }
 0x42a   :  { %1610 = vst [vmem:[#allocation11 + $0x38] sm:$0xff] %v2466_v45 }
 0x42b   :  { %1632 = dma.vmem_to_hbm [thread:$0]  %s1628_s14, 1024, %s1630_s4, [#allocation12]  }
 0x42c   :  { %2617 = dma.done.wait [#allocation4], 128  }
 0x42d   :  { %2618 = vsyncadd [#allocation4], 4294967168 }
 0x42e   :  { %2619 = dma.done.wait [#allocation12], 1024  }
 0x42f   :  { %2620 = vsyncadd [#allocation12], 4294966272 }
 0x430   :  { %1641 = vsyncpa [#allocation3], 1 }
 0x431   :  { %1642 = vsyncpa [#allocation6], 1 }
 0x432   :  { %1643 = vsyncpa [#allocation9], 1 }
 0x433   :  { %1644 = vsyncpa [#allocation4], 1 }
 0x434   :  { %1645 = vsyncpa [#allocation12], 1 }

</bundles_post_ra>
